<compile_context>
chip_gen: v6e
topology: v6e:2x2x1
jax: 0.10.0
libtpu: 0.0.40
codegen_flags: <defaults>
</compile_context>

<pallas_src>
import jax
import jax.numpy as jnp
from jax.experimental import pallas as pl
from jax.experimental.pallas import tpu as pltpu


def _meta_gating_kernel(x_ref, w1_ref, b1_ref, w2_ref, b2_ref, w3_ref, b3_ref,
                        out_ref):
    """Fused 3-layer MLP + softmax for one batch tile.

    x:        bf16 [bt, input_dim]   (concat of prompt/code/scores/uncertainty)
    w1/w2/w3: bf16 weights (VMEM-resident); b1/b2/b3: f32 biases (1, ...)
    out:      f32 [bt, num_oracles] softmax weights
    """
    # ---- Layer 1: single fused matmul over the concatenated features ----
    h1 = jnp.dot(x_ref[...], w1_ref[...], preferred_element_type=jnp.float32)
    h1 = jnp.maximum(h1 + b1_ref[...], 0.0)          # ReLU; Dropout = identity (eval)

    # ---- Layer 2 ----
    h2 = jnp.dot(h1.astype(jnp.bfloat16), w2_ref[...],
                 preferred_element_type=jnp.float32)
    h2 = jnp.maximum(h2 + b2_ref[...], 0.0)           # ReLU; Dropout = identity (eval)

    # ---- Layer 3 + softmax(dim=-1) ----
    logits = jnp.dot(h2.astype(jnp.bfloat16), w3_ref[...],
                     preferred_element_type=jnp.float32) + b3_ref[...]
    m = jnp.max(logits, axis=-1, keepdims=True)
    e = jnp.exp(logits - m)
    out_ref[...] = (e / jnp.sum(e, axis=-1, keepdims=True)).astype(out_ref.dtype)


def _round_up(x, m):
    return ((x + m - 1) // m) * m


def meta_gating_forward(prompt_emb, code_emb, oracle_scores, uncertainty_scores,
                        params, *, block_batch=2048):
    """Fused MLP + softmax gating.

    prompt_emb:         [B, E]
    code_emb:           [B, E]
    oracle_scores:      [B, num_oracles]
    uncertainty_scores: [B, 1]
    returns weights:    [B, num_oracles] (f32)
    """
    batch, embed_dim = prompt_emb.shape
    input_dim, hidden_dim = params["w1"].shape
    num_oracles = params["w3"].shape[1]
    assert input_dim == 2 * embed_dim + num_oracles + 1
    assert block_batch % 16 == 0

    # Concat fused on the wrapper side (cheap: ~140 B/row; this kernel is
    # MXU-pass-bound, not HBM-bound). bf16 feed, f32 accumulation inside.
    feats = jnp.concatenate(
        [prompt_emb, code_emb, oracle_scores, uncertainty_scores], axis=-1
    ).astype(jnp.bfloat16)

    w1 = params["w1"].astype(jnp.bfloat16)
    w2 = params["w2"].astype(jnp.bfloat16)
    w3 = params["w3"].astype(jnp.bfloat16)
    b1 = params["b1"].astype(jnp.float32)
    b2 = params["b2"].astype(jnp.float32)
    b3 = params["b3"].astype(jnp.float32)

    # Batch tile selection:
    #  * pad batch to a multiple of 16 (bf16 sublane packing),
    #  * use >= 2 grid tiles whenever the batch is big enough (v7x megacore),
    #  * cap the tile at block_batch (per-tile VMEM stays tiny; <10 MiB at 4096).
    base = _round_up(batch, 16)
    if base <= 32:
        bt = base
    else:
        bt = min(block_batch, _round_up((base + 1) // 2, 16))
    padded = _round_up(batch, bt)
    n_tiles = padded // bt

    if padded != batch:
        feats = jnp.pad(feats, ((0, padded - batch), (0, 0)))

    row = pl.BlockSpec((bt, input_dim), lambda i: (i, 0))      # batch-tiled stream
    const = lambda shape: pl.BlockSpec(shape, lambda i: (0, 0))  # VMEM-resident

    flops = 2 * padded * (input_dim * hidden_dim
                          + hidden_dim * hidden_dim
                          + hidden_dim * num_oracles)
    bytes_accessed = (padded * input_dim * 2                       # bf16 activations in
                      + padded * num_oracles * 4                   # f32 out
                      + (input_dim * hidden_dim + hidden_dim * hidden_dim
                         + hidden_dim * num_oracles) * 2           # bf16 weights
                      + (2 * hidden_dim + num_oracles) * 4)        # f32 biases

    out = pl.pallas_call(
        _meta_gating_kernel,
        out_shape=jax.ShapeDtypeStruct((padded, num_oracles), jnp.float32),
        grid=(n_tiles,),
        in_specs=[
            row,                               # concatenated features
            const((input_dim, hidden_dim)),    # w1
            const((1, hidden_dim)),            # b1
            const((hidden_dim, hidden_dim)),   # w2
            const((1, hidden_dim)),            # b2
            const((hidden_dim, num_oracles)),  # w3
            const((1, num_oracles)),           # b3
        ],
        out_specs=pl.BlockSpec((bt, num_oracles), lambda i: (i, 0)),
        compiler_params=pltpu.CompilerParams(
            dimension_semantics=("parallel",),        # megacore-shard batch on v7x
            vmem_limit_bytes=32 * 1024 * 1024),
        cost_estimate=pl.CostEstimate(
            flops=flops,
            transcendentals=padded * num_oracles,     # exp in softmax
            bytes_accessed=bytes_accessed),
    )(feats, w1, b1, w2, b2, w3, b3)

    return out[:batch]


def meta_gating_reference(prompt_emb, code_emb, oracle_scores, uncertainty_scores,
                          params):
    """Pure-JAX f32 reference (eval mode: dropout = identity)."""
    feats = jnp.concatenate(
        [prompt_emb, code_emb, oracle_scores, uncertainty_scores], axis=-1
    ).astype(jnp.float32)
    h1 = jax.nn.relu(feats @ params["w1"] + params["b1"])
    h2 = jax.nn.relu(h1 @ params["w2"] + params["b2"])
    return jax.nn.softmax(h2 @ params["w3"] + params["b3"], axis=-1)


def init_params(key, input_dim, num_oracles, hidden_dim):
    """nn.Linear-style init (uniform +-1/sqrt(fan_in)); weights stored [in, out]."""
    ks = jax.random.split(key, 6)

    def lin(kw, kb, fan_in, fan_out):
        bound = 1.0 / jnp.sqrt(float(fan_in))
        w = jax.random.uniform(kw, (fan_in, fan_out), jnp.float32, -bound, bound)
        b = jax.random.uniform(kb, (1, fan_out), jnp.float32, -bound, bound)
        return w, b

    w1, b1 = lin(ks[0], ks[1], input_dim, hidden_dim)
    w2, b2 = lin(ks[2], ks[3], hidden_dim, hidden_dim)
    w3, b3 = lin(ks[4], ks[5], hidden_dim, num_oracles)
    return {"w1": w1, "b1": b1, "w2": w2, "b2": b2, "w3": w3, "b3": b3}


if __name__ == "__main__":
    # Small, module-consistent shapes; batch chosen to exercise padding (500 -> 512)
    # and the >=2-tile path (2 tiles of 256 rows on the default block_batch).
    batch = 500
    embed_dim = 32
    num_oracles = 4
    hidden_dim = 128
    input_dim = 2 * embed_dim + num_oracles + 1   # cat of the 4 inputs = 69

    key = jax.random.PRNGKey(0)
    k_p, k_c, k_o, k_u, k_w = jax.random.split(key, 5)

    prompt_emb = jax.random.normal(k_p, (batch, embed_dim), jnp.float32)
    code_emb = jax.random.normal(k_c, (batch, embed_dim), jnp.float32)
    oracle_scores = jax.random.uniform(k_o, (batch, num_oracles), jnp.float32)
    uncertainty = jax.random.uniform(k_u, (batch, 1), jnp.float32)

    params = init_params(k_w, input_dim, num_oracles, hidden_dim)

    weights = meta_gating_forward(prompt_emb, code_emb, oracle_scores, uncertainty,
                                  params)
    weights = jax.block_until_ready(weights)

    # Checks: shape, rows sum to ~1, matches f32 reference within bf16 tolerance.
    ref = meta_gating_reference(prompt_emb, code_emb, oracle_scores, uncertainty,
                                params)
    if weights.shape != (batch, num_oracles):
        raise AssertionError(f"bad output shape {weights.shape}")
    row_sums = jnp.sum(weights, axis=-1)
    if not bool(jnp.all(jnp.abs(row_sums - 1.0) < 1e-3)):
        raise AssertionError("softmax rows do not sum to 1")
    max_err = float(jnp.max(jnp.abs(weights - ref)))
    if max_err > 3e-2:
        raise AssertionError(f"mismatch vs reference: max abs err {max_err}")

    print("KERNEL_OK")
</pallas_src>

<mosaic_0001>
module attributes {stable_mosaic.version = 11 : i64} {
  func.func @_meta_gating_kernel(%arg0: i32, %arg1: memref<256x69xbf16, #tpu.memory_space<vmem>>, %arg2: memref<69x128xbf16, #tpu.memory_space<vmem>>, %arg3: memref<1x128xf32, #tpu.memory_space<vmem>>, %arg4: memref<128x128xbf16, #tpu.memory_space<vmem>>, %arg5: memref<1x128xf32, #tpu.memory_space<vmem>>, %arg6: memref<128x4xbf16, #tpu.memory_space<vmem>>, %arg7: memref<1x4xf32, #tpu.memory_space<vmem>>, %arg8: memref<256x4xf32, #tpu.memory_space<vmem>>) attributes {dimension_semantics = [#tpu.dimension_semantics<parallel>], iteration_bounds = array<i64: 2>, scalar_prefetch = 0 : i64, scratch_operands = 0 : i64, tpu.core_type = #tpu.core_type<tc>, window_params = [{transform_indices = @transform_0, window_bounds = array<i64: 256, 69>}, {pipeline_mode = #tpu.pipeline_mode<synchronous>, transform_indices = @transform_1, window_bounds = array<i64: 69, 128>}, {pipeline_mode = #tpu.pipeline_mode<synchronous>, transform_indices = @transform_2, window_bounds = array<i64: 1, 128>}, {pipeline_mode = #tpu.pipeline_mode<synchronous>, transform_indices = @transform_3, window_bounds = array<i64: 128, 128>}, {pipeline_mode = #tpu.pipeline_mode<synchronous>, transform_indices = @transform_4, window_bounds = array<i64: 1, 128>}, {pipeline_mode = #tpu.pipeline_mode<synchronous>, transform_indices = @transform_5, window_bounds = array<i64: 128, 4>}, {pipeline_mode = #tpu.pipeline_mode<synchronous>, transform_indices = @transform_6, window_bounds = array<i64: 1, 4>}, {transform_indices = @transform_7, window_bounds = array<i64: 256, 4>}]} {
    %c0 = arith.constant 0 : index
    %c0_0 = arith.constant 0 : index
    %0 = vector.load %arg1[%c0, %c0_0] : memref<256x69xbf16, #tpu.memory_space<vmem>>, vector<256x69xbf16>
    %c0_1 = arith.constant 0 : index
    %c0_2 = arith.constant 0 : index
    %1 = vector.load %arg2[%c0_1, %c0_2] : memref<69x128xbf16, #tpu.memory_space<vmem>>, vector<69x128xbf16>
    %cst = arith.constant dense<0.000000e+00> : vector<256x128xf32>
    %2 = tpu.matmul %0, %1, %cst {dimension_numbers = #tpu.dot_dimension_numbers<[1], [0], [0], [1], [0, 0, 1, 1], [], []>} : vector<256x69xbf16>, vector<69x128xbf16>, vector<256x128xf32> -> vector<256x128xf32>
    %c0_3 = arith.constant 0 : index
    %c0_4 = arith.constant 0 : index
    %3 = vector.load %arg3[%c0_3, %c0_4] : memref<1x128xf32, #tpu.memory_space<vmem>>, vector<1x128xf32>
    %4 = vector.broadcast %3 : vector<1x128xf32> to vector<256x128xf32>
    %5 = arith.addf %2, %4 : vector<256x128xf32>
    %cst_5 = arith.constant 0.000000e+00 : f32
    %6 = vector.broadcast %cst_5 : f32 to vector<256x128xf32>
    %7 = arith.maximumf %5, %6 : vector<256x128xf32>
    %8 = arith.truncf %7 : vector<256x128xf32> to vector<256x128xbf16>
    %c0_6 = arith.constant 0 : index
    %c0_7 = arith.constant 0 : index
    %9 = vector.load %arg4[%c0_6, %c0_7] : memref<128x128xbf16, #tpu.memory_space<vmem>>, vector<128x128xbf16>
    %cst_8 = arith.constant dense<0.000000e+00> : vector<256x128xf32>
    %10 = tpu.matmul %8, %9, %cst_8 {dimension_numbers = #tpu.dot_dimension_numbers<[1], [0], [0], [1], [0, 0, 1, 1], [], []>} : vector<256x128xbf16>, vector<128x128xbf16>, vector<256x128xf32> -> vector<256x128xf32>
    %c0_9 = arith.constant 0 : index
    %c0_10 = arith.constant 0 : index
    %11 = vector.load %arg5[%c0_9, %c0_10] : memref<1x128xf32, #tpu.memory_space<vmem>>, vector<1x128xf32>
    %12 = vector.broadcast %11 : vector<1x128xf32> to vector<256x128xf32>
    %13 = arith.addf %10, %12 : vector<256x128xf32>
    %cst_11 = arith.constant 0.000000e+00 : f32
    %14 = vector.broadcast %cst_11 : f32 to vector<256x128xf32>
    %15 = arith.maximumf %13, %14 : vector<256x128xf32>
    %16 = arith.truncf %15 : vector<256x128xf32> to vector<256x128xbf16>
    %c0_12 = arith.constant 0 : index
    %c0_13 = arith.constant 0 : index
    %17 = vector.load %arg6[%c0_12, %c0_13] : memref<128x4xbf16, #tpu.memory_space<vmem>>, vector<128x4xbf16>
    %cst_14 = arith.constant dense<0.000000e+00> : vector<256x4xf32>
    %18 = tpu.matmul %16, %17, %cst_14 {dimension_numbers = #tpu.dot_dimension_numbers<[1], [0], [0], [1], [0, 0, 1, 1], [], []>} : vector<256x128xbf16>, vector<128x4xbf16>, vector<256x4xf32> -> vector<256x4xf32>
    %c0_15 = arith.constant 0 : index
    %c0_16 = arith.constant 0 : index
    %19 = vector.load %arg7[%c0_15, %c0_16] : memref<1x4xf32, #tpu.memory_space<vmem>>, vector<1x4xf32>
    %20 = vector.broadcast %19 : vector<1x4xf32> to vector<256x4xf32>
    %21 = arith.addf %18, %20 : vector<256x4xf32>
    %cst_17 = arith.constant dense<0xFF800000> : vector<256xf32>
    %22 = vector.multi_reduction <maximumf>, %21, %cst_17 [1] : vector<256x4xf32> to vector<256xf32>
    %23 = vector.shape_cast %22 : vector<256xf32> to vector<256x1xf32>
    %24 = vector.broadcast %23 : vector<256x1xf32> to vector<256x4xf32>
    %25 = arith.subf %21, %24 : vector<256x4xf32>
    %26 = math.exp %25 : vector<256x4xf32>
    %cst_18 = arith.constant dense<0.000000e+00> : vector<256xf32>
    %27 = vector.multi_reduction <add>, %26, %cst_18 [1] : vector<256x4xf32> to vector<256xf32>
    %28 = vector.shape_cast %27 : vector<256xf32> to vector<256x1xf32>
    %29 = vector.broadcast %28 : vector<256x1xf32> to vector<256x4xf32>
    %30 = arith.divf %26, %29 : vector<256x4xf32>
    %c0_19 = arith.constant 0 : index
    %c0_20 = arith.constant 0 : index
    %31 = vector.load %arg8[%c0_19, %c0_20] : memref<256x4xf32, #tpu.memory_space<vmem>>, vector<256x4xf32>
    tpu.vector_store %arg8[%c0_19, %c0_20], %30 {strides = array<i32>} : memref<256x4xf32, #tpu.memory_space<vmem>>, vector<256x4xf32>,
    return
  }
  func.func @transform_0(%arg0: i32) -> (i32, i32) {
    %c0_i32 = arith.constant 0 : i32
    %c0_i32_0 = arith.constant 0 : i32
    return %arg0, %c0_i32 : i32, i32
  }
  func.func @transform_1(%arg0: i32) -> (i32, i32) {
    %c0_i32 = arith.constant 0 : i32
    %c0_i32_0 = arith.constant 0 : i32
    %c0_i32_1 = arith.constant 0 : i32
    return %c0_i32, %c0_i32_0 : i32, i32
  }
  func.func @transform_2(%arg0: i32) -> (i32, i32) {
    %c0_i32 = arith.constant 0 : i32
    %c0_i32_0 = arith.constant 0 : i32
    %c0_i32_1 = arith.constant 0 : i32
    return %c0_i32, %c0_i32_0 : i32, i32
  }
  func.func @transform_3(%arg0: i32) -> (i32, i32) {
    %c0_i32 = arith.constant 0 : i32
    %c0_i32_0 = arith.constant 0 : i32
    %c0_i32_1 = arith.constant 0 : i32
    return %c0_i32, %c0_i32_0 : i32, i32
  }
  func.func @transform_4(%arg0: i32) -> (i32, i32) {
    %c0_i32 = arith.constant 0 : i32
    %c0_i32_0 = arith.constant 0 : i32
    %c0_i32_1 = arith.constant 0 : i32
    return %c0_i32, %c0_i32_0 : i32, i32
  }
  func.func @transform_5(%arg0: i32) -> (i32, i32) {
    %c0_i32 = arith.constant 0 : i32
    %c0_i32_0 = arith.constant 0 : i32
    %c0_i32_1 = arith.constant 0 : i32
    return %c0_i32, %c0_i32_0 : i32, i32
  }
  func.func @transform_6(%arg0: i32) -> (i32, i32) {
    %c0_i32 = arith.constant 0 : i32
    %c0_i32_0 = arith.constant 0 : i32
    %c0_i32_1 = arith.constant 0 : i32
    return %c0_i32, %c0_i32_0 : i32, i32
  }
  func.func @transform_7(%arg0: i32) -> (i32, i32) {
    %c0_i32 = arith.constant 0 : i32
    %c0_i32_0 = arith.constant 0 : i32
    return %arg0, %c0_i32 : i32, i32
  }
}

</mosaic_0001>

<bundles_post_ra>
// kernel: tpu_custom_call.1
= control target key start
LH: loop header
LB: loop body
LE: loop exit
PB: predicated region body
PF: predicated region fallthrough
CT: control target
= control target key end

     0   :  { %s2163_s24 = smov 0   ;;  %s2793_s0 = inlined_call_operand.vmem [shape: bf16[512,69], index: 0, kind: input, shape index: {}]   ;;  %s2794_s1 = inlined_call_operand.vmem [shape: bf16[69,128], index: 1, kind: input, shape index: {}]   ;;  %s2795_s2 = inlined_call_operand.vmem [shape: f32[1,128], index: 2, kind: input, shape index: {}]   ;;  %s2796_s3 = inlined_call_operand.vmem [shape: bf16[128,128], index: 3, kind: input, shape index: {}]   ;;  %s2797_s4 = inlined_call_operand.vmem [shape: f32[1,128], index: 4, kind: input, shape index: {}]   ;;  %s2798_s5 = inlined_call_operand.vmem [shape: bf16[128,4], index: 5, kind: input, shape index: {}]   ;;  %s2799_s6 = inlined_call_operand.vmem [shape: f32[1,4], index: 6, kind: input, shape index: {}]   ;;  %s2800_s7 = inlined_call_operand.vmem [shape: f32[512,4], index: 7, kind: output, shape index: {}]  }
   0x1 LB: > { %s1656_s25 = sadd.s32 4294967295, %s2120_s24   ;;  %p1660_p0 = scmp.ge.s32.totalorder %s2120_s24, 1  ;;  %s2120_s24 = sphi %s2163_s24, %s17_s24  }
   0x2   : > { %p238_p1 = scmp.lt.s32.totalorder %s2120_s24, 3 }
   0x4   : > { %p239_p2 = pnand %p1660_p0, %p238_p1 }
   0x5   : > { %s1661_s30 = sshll.u32 (!%p239_p2), %s1656_s25, 5 }
   0x6   : > { %242 = sbr.rel (%p239_p2) target bundleno = 1022 (0x3fe), region = 48  ;;  %p271_p3 = scmp.lt.s32.totalorder (!%p239_p2), %s1661_s30, 63 }
   0xb   : > { %v1949_v0 = vld [vmem:[%s2794_s1 + $0x20] ss:$0 sps:$4 sm:$0x77]   ;;  %vm487_vm0 = vcmask 1041408   ;;  %vm488_vm1 = vcmask 1042432   ;;  %v2122_v1 = vmov 65535  }
   0xc   : > { %v489_v2 = vsel %vm487_vm0, 4294967295, %v2122_v1  ;;  %v1950_v5 = vld [vmem:[%s2794_s1 + $0x18] sm:$0xff]   ;;  %s2802_s30 = smov (!%p271_p3, %s1661_s30), 63  ;;  %v1951_v6 = vld [vmem:[%s2794_s1 + $0x10] sm:$0xff]   ;;  %vm438_vm2 = vcmask 564224   ;;  %v1952_v8 = vld [vmem:[%s2794_s1 + $0x8] sm:$0xff]  }
   0xd   : > { %v490_v3 = vsel %vm488_vm1, %v489_v2, 0  ;;  %s1662_s10 = sshll.u32 %s2802_s30, 2  ;;  %v1953_v9 = vld [vmem:[%s2794_s1] sm:$0xff]   ;;  %v1970_v10 = vld [vmem:[%s2796_s3 + $0x38] sm:$0xff]   ;;  %v1971_v16 = vld [vmem:[%s2796_s3 + $0x30] sm:$0xff]   ;;  %vm1215_vm3 = vcmask 31744  }
   0xe   : > { %v492_v4 = vand.u32 %v1949_v0, %v490_v3  ;;  %s2186_s13 = scalar_lea.vmem %s2793_s0, %s1662_s10  ;;  %v1972_v17 = vld [vmem:[%s2796_s3 + $0x28] sm:$0xff]   ;;  %v1973_v22 = vld [vmem:[%s2796_s3 + $0x20] sm:$0xff]   ;;  %v1974_v23 = vld [vmem:[%s2796_s3 + $0x18] sm:$0xff]   ;;  %s1664_s14 = sshll.u32 %s2802_s30, 3 }
   0xf   : > { %v1954_v7 = vld [vmem:[%s2186_s13] sm:$0xff]   ;;  %v1955_v12 = vld [vmem:[%s2186_s13 + $0x8] sm:$0xff]   ;;  %v1956_v13 = vld [vmem:[%s2186_s13 + $0x10] sm:$0xff]   ;;  %s2692_s17 = scalar_lea.vmem %s2800_s7, %s1664_s14 }
  0x10   : > { %1792 = vmatprep.subr.bf16.mxu0 %v492_v4  ;;  %1930 = vmatprep.subr.bf16.mxu1 %v492_v4  ;;  %v1962_v11 = vld [vmem:[%s2186_s13 + $0x40] sm:$0xff]   ;;  %v1963_v14 = vld [vmem:[%s2186_s13 + $0x48] sm:$0xff]   ;;  %v1964_v15 = vld [vmem:[%s2186_s13 + $0x50] sm:$0xff]  }
  0x11   : > { %1793 = vmatpush3.bf16.msra.mxu0 %v492_v4  ;;  %1935 = vmatpush3.bf16.msra.mxu1 %v492_v4  ;;  %v1957_v18 = vld [vmem:[%s2186_s13 + $0x18] sm:$0xff]   ;;  %v1958_v20 = vld [vmem:[%s2186_s13 + $0x20] sm:$0xff]   ;;  %v1959_v24 = vld [vmem:[%s2186_s13 + $0x28] sm:$0xff]  }
  0x12   : > { %1794 = vmatprep.subr.bf16.mxu0 %v1950_v5  ;;  %1931 = vmatprep.subr.bf16.mxu1 %v1950_v5  ;;  %v1965_v19 = vld [vmem:[%s2186_s13 + $0x58] sm:$0xff]   ;;  %v1966_v21 = vld [vmem:[%s2186_s13 + $0x60] sm:$0xff]   ;;  %v1967_v25 = vld [vmem:[%s2186_s13 + $0x68] sm:$0xff]  }
  0x13   : > { %1802 = vmatprep.mubr.msk.bf16.mxu0 %vm438_vm2, %v1954_v7  ;;  %1818 = vmatprep.mubr.msk.bf16.mxu1 %vm438_vm2, %v1962_v11  ;;  %v1960_v26 = vld [vmem:[%s2186_s13 + $0x30] sm:$0xff]   ;;  %v1961_v28 = vld [vmem:[%s2186_s13 + $0x38] sm:$0xff]   ;;  %v1976_v31 = vld [vmem:[%s2796_s3 + $0x8] sm:$0xff]  }
  0x14   : > { %v1968_v27 = vld [vmem:[%s2186_s13 + $0x70] sm:$0xff]   ;;  %v1969_v29 = vld [vmem:[%s2186_s13 + $0x78] sm:$0xff]   ;;  %v1977_v32 = vld [vmem:[%s2796_s3] sm:$0xff]  }
  0x15   : > { %1795 = vmatpush3.bf16.msra.mxu0 %v1950_v5  ;;  %1936 = vmatpush3.bf16.msra.mxu1 %v1950_v5  ;;  %v1975_v30 = vld [vmem:[%s2796_s3 + $0x10] sm:$0xff]   ;;  %v1978_v33 = vld [vmem:[%s2798_s5 + $0x38] sm:$0xff]   ;;  %v1980_v35 = vld [vmem:[%s2798_s5 + $0x28] sm:$0xff]  }
  0x16   : > { %1796 = vmatprep.subr.bf16.mxu0 %v1951_v6  ;;  %1932 = vmatprep.subr.bf16.mxu1 %v1951_v6  ;;  %v1979_v34 = vld [vmem:[%s2798_s5 + $0x30] sm:$0xff]   ;;  %v1981_v36 = vld [vmem:[%s2798_s5 + $0x20] sm:$0xff]   ;;  %v1982_v37 = vld [vmem:[%s2798_s5 + $0x18] sm:$0xff]  }
  0x17   : > { %v2270_v42 = vld [vmem:[%s2795_s2] ss:$0 sm:$0xff] }
  0x19   : > { %1797 = vmatpush3.bf16.msra.mxu0 %v1951_v6  ;;  %1937 = vmatpush3.bf16.msra.mxu1 %v1951_v6 }
  0x1a   : > { %1798 = vmatprep.subr.bf16.mxu0 %v1952_v8  ;;  %1933 = vmatprep.subr.bf16.mxu1 %v1952_v8 }
  0x1d   : > { %1799 = vmatpush3.bf16.msra.mxu0 %v1952_v8  ;;  %1938 = vmatpush3.bf16.msra.mxu1 %v1952_v8 }
  0x1e   : > { %1800 = vmatprep.subr.bf16.mxu0 %v1953_v9  ;;  %1934 = vmatprep.subr.bf16.mxu1 %v1953_v9 }
  0x21   : > { %1801 = vmatpush3.bf16.msra.mxu0 %v1953_v9  ;;  %1939 = vmatpush3.bf16.msra.mxu1 %v1953_v9 }
  0x22   : > { %1834 = vmatprep.subr.bf16.mxu1 %v1970_v10  ;;  %1882 = vmatprep.subr.bf16.mxu0 %v1978_v33 }
  0x24   : > { %1803 = vmatmul.mubr.msk.bf16.vlgmr.msra.gmra.mxu0 %vm438_vm2, %v1955_v12  ;;  %1819 = vmatmul.mubr.msk.bf16.vlgmr.msra.gmra.mxu1 %vm438_vm2, %v1963_v14 }
  0x25   : > { %1806 = vmatprep.mubr.msk.bf16.mxu0 %vm438_vm2, %v1956_v13  ;;  %1822 = vmatprep.mubr.msk.bf16.mxu1 %vm438_vm2, %v1964_v15 }
  0x26   : > { %1835 = vmatpush3.bf16.msra.mxu1 %v1970_v10  ;;  %1883 = vmatpush3.bf16.msra.mxu0 %v1978_v33 }
  0x27   : > { %1836 = vmatprep.subr.bf16.mxu1 %v1971_v16  ;;  %1884 = vmatprep.subr.bf16.mxu0 %v1979_v34 }
  0x2a   : > { %1837 = vmatpush3.bf16.msra.mxu1 %v1971_v16  ;;  %1885 = vmatpush3.bf16.msra.mxu0 %v1979_v34 }
  0x2b   : > { %1838 = vmatprep.subr.bf16.mxu1 %v1972_v17  ;;  %1886 = vmatprep.subr.bf16.mxu0 %v1980_v35 }
  0x2c   : > { %1807 = vmatmul.mubr.msk.bf16.gmra.mxu0 %vm438_vm2, %v1957_v18  ;;  %1823 = vmatmul.mubr.msk.bf16.gmra.mxu1 %vm438_vm2, %v1965_v19 }
  0x2d   : > { %1810 = vmatprep.mubr.msk.bf16.mxu0 %vm438_vm2, %v1958_v20  ;;  %1826 = vmatprep.mubr.msk.bf16.mxu1 %vm438_vm2, %v1966_v21 }
  0x2e   : > { %1839 = vmatpush3.bf16.msra.mxu1 %v1972_v17  ;;  %1887 = vmatpush3.bf16.msra.mxu0 %v1980_v35 }
  0x2f   : > { %1840 = vmatprep.subr.bf16.mxu1 %v1973_v22  ;;  %1888 = vmatprep.subr.bf16.mxu0 %v1981_v36 }
  0x32   : > { %1841 = vmatpush3.bf16.msra.mxu1 %v1973_v22  ;;  %1889 = vmatpush3.bf16.msra.mxu0 %v1981_v36 }
  0x33   : > { %1842 = vmatprep.subr.bf16.mxu1 %v1974_v23  ;;  %1890 = vmatprep.subr.bf16.mxu0 %v1982_v37 }
  0x34   : > { %1811 = vmatmul.mubr.msk.bf16.gmra.mxu0 %vm438_vm2, %v1959_v24  ;;  %1827 = vmatmul.mubr.msk.bf16.gmra.mxu1 %vm438_vm2, %v1967_v25 }
  0x35   : > { %1814 = vmatprep.mubr.msk.bf16.mxu0 %vm438_vm2, %v1960_v26  ;;  %1830 = vmatprep.mubr.msk.bf16.mxu1 %vm438_vm2, %v1968_v27 }
  0x36   : > { %1843 = vmatpush3.bf16.msra.mxu1 %v1974_v23  ;;  %1891 = vmatpush3.bf16.msra.mxu0 %v1982_v37 }
  0x37   : > { %1844 = vmatprep.subr.bf16.mxu1 %v1975_v30 }
  0x3a   : > { %1845 = vmatpush3.bf16.msra.mxu1 %v1975_v30 }
  0x3b   : > { %1846 = vmatprep.subr.bf16.mxu1 %v1976_v31 }
  0x3c   : > { %1815 = vmatmul.mubr.msk.bf16.gmra.mxu0 %vm438_vm2, %v1961_v28  ;;  %1831 = vmatmul.mubr.msk.bf16.gmra.mxu1 %vm438_vm2, %v1969_v29 }
  0x3e   : > { %1847 = vmatpush3.bf16.msra.mxu1 %v1976_v31 }
  0x3f   : > { %1848 = vmatprep.subr.bf16.mxu1 %v1977_v32 }
  0x42   : > { %1849 = vmatpush3.bf16.msra.mxu1 %v1977_v32 }
  0xe4   : > { %v1804_v38 = vpop.f32.mrf.mxu0  ;;  %v2265_v39 = vpop.f32.mrf.mxu1 }
  0xe5   : > { %v537_v47 = vadd.f32 %v1804_v38, %v2270_v42 }
  0xe6   : > { %v528_v40 = vpop.f32.mrf.mxu0  ;;  %v592_v41 = vpop.f32.mrf.mxu1 }
  0xe7   : > { %v529_v45 = vadd.f32 %v2270_v42, %v528_v40  ;;  %v657_v56 = vmax.f32 %v537_v47, 0.0  ;;  %v593_v28 = vadd.f32 %v2270_v42, %v592_v41 }
  0xe8   : > { %v1805_v43 = vpop.f32.mrf.mxu0  ;;  %v2272_v44 = vpop.f32.mrf.mxu1 }
  0xe9   : > { %v540_v46 = vadd.f32 %v1805_v43, %v2270_v42  ;;  %v655_v54 = vmax.f32 %v529_v45, 0.0  ;;  %v671_v37 = vmax.f32 %v593_v28, 0.0  ;;  %v2329_v28 = vld [vmem:[%s2797_s4] ss:$0 sm:$0xff] }
  0xea   : > { %v531_v48 = vpop.f32.mrf.mxu0  ;;  %v595_v49 = vpop.f32.mrf.mxu1 }
  0xeb   : > { %v532_v50 = vadd.f32 %v2270_v42, %v531_v48  ;;  %v658_v51 = vmax.f32 %v540_v46, 0.0  ;;  %v596_v29 = vadd.f32 %v2270_v42, %v595_v49 }
  0xec   : > { %v1808_v52 = vpop.f32.mrf.mxu0  ;;  %v2278_v53 = vpop.f32.mrf.mxu1 }
  0xed   : > { %v656_v55 = vmax.f32 %v532_v50, 0.0  ;;  %v688_v60 = vpack.c.bf16 %v658_v51, %v657_v56  ;;  %v553_v1 = vadd.f32 %v1808_v52, %v2270_v42  ;;  %v672_v40 = vmax.f32 %v596_v29, 0.0 }
  0xee   : > { %v544_v57 = vpop.f32.mrf.mxu0  ;;  %v608_v58 = vpop.f32.mrf.mxu1  ;;  %v601_v52 = vadd.f32 %v2265_v39, %v2270_v42  ;;  %v617_v39 = vadd.f32 %v2278_v53, %v2270_v42 }
  0xef   : > { %v687_v59 = vpack.c.bf16 %v656_v55, %v655_v54  ;;  %v545_v63 = vadd.f32 %v2270_v42, %v544_v57  ;;  %v661_v9 = vmax.f32 %v553_v1, 0.0  ;;  %v695_v49 = vpack.c.bf16 %v672_v40, %v671_v37 }
  0xf0   : > { %v1809_v61 = vpop.f32.mrf.mxu0  ;;  %v2280_v62 = vpop.f32.mrf.mxu1  ;;  %v609_v50 = vadd.f32 %v2270_v42, %v608_v58  ;;  %v604_v55 = vadd.f32 %v2272_v44, %v2270_v42 }
  0xf1   : > { %v556_v0 = vadd.f32 %v1809_v61, %v2270_v42  ;;  %1850 = vmatprep.mubr.bf16.mxu1 %v687_v59  ;;  %v659_v7 = vmax.f32 %v545_v63, 0.0  ;;  %v620_v44 = vadd.f32 %v2280_v62, %v2270_v42 }
  0xf2   : > { %v547_v2 = vpop.f32.mrf.mxu0  ;;  %1851 = vmatmul.mubr.bf16.vlgmr.msra.gmra.mxu1 %v688_v60  ;;  %v611_v6 = vpop.f32.mrf.mxu1  ;;  %v675_v57 = vmax.f32 %v609_v50, 0.0  ;;  %v673_v60 = vmax.f32 %v601_v52, 0.0  ;;  %v674_v61 = vmax.f32 %v604_v55, 0.0 }
  0xf3   : > { %v548_v3 = vadd.f32 %v2270_v42, %v547_v2  ;;  %v662_v4 = vmax.f32 %v556_v0, 0.0  ;;  %v612_v51 = vadd.f32 %v2270_v42, %v611_v6  ;;  %v677_v6 = vmax.f32 %v617_v39, 0.0 }
  0xf4   : > { %v1812_v5 = vpop.f32.mrf.mxu0  ;;  %v2286_v14 = vpop.f32.mrf.mxu1  ;;  %v696_v2 = vpack.c.bf16 %v674_v61, %v673_v60 }
  0xf5   : > { %v660_v8 = vmax.f32 %v548_v3, 0.0  ;;  %v690_v12 = vpack.c.bf16 %v662_v4, %v661_v9  ;;  %v569_v17 = vadd.f32 %v1812_v5, %v2270_v42  ;;  %v676_v59 = vmax.f32 %v612_v51, 0.0 }
  0xf6   : > { %v560_v10 = vpop.f32.mrf.mxu0  ;;  %v624_v22 = vpop.f32.mrf.mxu1  ;;  %v633_v53 = vadd.f32 %v2286_v14, %v2270_v42  ;;  %v1983_v14 = vld [vmem:[%s2798_s5 + $0x10] sm:$0xff]  }
  0xf7   : > { %v689_v11 = vpack.c.bf16 %v660_v8, %v659_v7  ;;  %v561_v15 = vadd.f32 %v2270_v42, %v560_v10  ;;  %v665_v25 = vmax.f32 %v569_v17, 0.0  ;;  %v697_v0 = vpack.c.bf16 %v676_v59, %v675_v57  ;;  %1892 = vmatprep.subr.bf16.mxu0 %v1983_v14 }
  0xf8   : > { %v1813_v13 = vpop.f32.mrf.mxu0  ;;  %v1829_v32 = vpop.f32.mrf.mxu1  ;;  %v625_v58 = vadd.f32 %v2270_v42, %v624_v22  ;;  %v678_v7 = vmax.f32 %v620_v44, 0.0  ;;  %1893 = vmatpush3.bf16.msra.mxu0 %v1983_v14 }
  0xf9   : > { %v572_v16 = vadd.f32 %v1813_v13, %v2270_v42  ;;  %1854 = vmatprep.mubr.bf16.mxu1 %v689_v11  ;;  %v663_v23 = vmax.f32 %v561_v15, 0.0  ;;  %v636_v13 = vadd.f32 %v1829_v32, %v2270_v42 }
  0xfa   : > { %v563_v18 = vpop.f32.mrf.mxu0  ;;  %1855 = vmatmul.mubr.bf16.gmra.mxu1 %v690_v12  ;;  %v627_v41 = vpop.f32.mrf.mxu1  ;;  %v679_v4 = vmax.f32 %v625_v58, 0.0  ;;  %v698_v12 = vpack.c.bf16 %v678_v7, %v677_v6 }
  0xfb   : > { %v564_v19 = vadd.f32 %v2270_v42, %v563_v18  ;;  %v666_v20 = vmax.f32 %v572_v16, 0.0  ;;  %v628_v1 = vadd.f32 %v2270_v42, %v627_v41  ;;  %v681_v16 = vmax.f32 %v633_v53, 0.0 }
  0xfc   : > { %v1816_v21 = vpop.f32.mrf.mxu0  ;;  %v1832_v56 = vpop.f32.mrf.mxu1  ;;  %v682_v17 = vmax.f32 %v636_v13, 0.0 }
  0xfd   : > { %v664_v24 = vmax.f32 %v564_v19, 0.0  ;;  %v692_v30 = vpack.c.bf16 %v666_v20, %v665_v25  ;;  %v585_v35 = vadd.f32 %v1816_v21, %v2270_v42  ;;  %v680_v5 = vmax.f32 %v628_v1, 0.0  ;;  %v1984_v25 = vld [vmem:[%s2798_s5 + $0x8] sm:$0xff]  }
  0xfe   : > { %v576_v26 = vpop.f32.mrf.mxu0  ;;  %v640_v63 = vpop.f32.mrf.mxu1  ;;  %v700_v19 = vpack.c.bf16 %v682_v17, %v681_v16  ;;  %v649_v20 = vadd.f32 %v1832_v56, %v2270_v42  ;;  %1894 = vmatprep.subr.bf16.mxu0 %v1984_v25 }
  0xff   : > { %v691_v27 = vpack.c.bf16 %v664_v24, %v663_v23  ;;  %v577_v33 = vadd.f32 %v2270_v42, %v576_v26  ;;  %v669_v47 = vmax.f32 %v585_v35, 0.0  ;;  %v699_v9 = vpack.c.bf16 %v680_v5, %v679_v4  ;;  %1895 = vmatpush3.bf16.msra.mxu0 %v1984_v25 }
 0x100   : > { %v1817_v31 = vpop.f32.mrf.mxu0  ;;  %v1833_v3 = vpop.f32.mrf.mxu1  ;;  %v641_v10 = vadd.f32 %v2270_v42, %v640_v63  ;;  %v685_v22 = vmax.f32 %v649_v20, 0.0 }
 0x101   : > { %v588_v34 = vadd.f32 %v1817_v31, %v2270_v42  ;;  %1858 = vmatprep.mubr.bf16.mxu1 %v691_v27  ;;  %v667_v45 = vmax.f32 %v577_v33, 0.0  ;;  %v652_v21 = vadd.f32 %v1833_v3, %v2270_v42 }
 0x102   : > { %v579_v36 = vpop.f32.mrf.mxu0  ;;  %1859 = vmatmul.mubr.bf16.gmra.mxu1 %v692_v30  ;;  %v643_v8 = vpop.f32.mrf.mxu1  ;;  %v683_v62 = vmax.f32 %v641_v10, 0.0 }
 0x103   : > { %v580_v38 = vadd.f32 %v2270_v42, %v579_v36  ;;  %v670_v43 = vmax.f32 %v588_v34, 0.0  ;;  %v644_v11 = vadd.f32 %v2270_v42, %v643_v8  ;;  %v686_v23 = vmax.f32 %v652_v21, 0.0  ;;  %v1985_v42 = vld [vmem:[%s2798_s5] sm:$0xff]  }
 0x104   : > { %1896 = vmatprep.subr.bf16.mxu0 %v1985_v42 }
 0x105   : > { %v668_v46 = vmax.f32 %v580_v38, 0.0  ;;  %v694_v54 = vpack.c.bf16 %v670_v43, %v669_v47  ;;  %v684_v15 = vmax.f32 %v644_v11, 0.0  ;;  %v702_v24 = vpack.c.bf16 %v686_v23, %v685_v22  ;;  %1897 = vmatpush3.bf16.msra.mxu0 %v1985_v42 }
 0x107   : > { %v693_v48 = vpack.c.bf16 %v668_v46, %v667_v45  ;;  %v701_v18 = vpack.c.bf16 %v684_v15, %v683_v62 }
 0x109   : > { %1862 = vmatprep.mubr.bf16.mxu1 %v693_v48 }
 0x10a   : > { %1863 = vmatmul.mubr.bf16.gmra.mxu1 %v694_v54 }
 0x10b   : > { %1866 = vmatprep.mubr.bf16.mxu1 %v695_v49 }
 0x112   : > { %1867 = vmatmul.mubr.bf16.gmra.mxu1 %v696_v2 }
 0x113   : > { %1870 = vmatprep.mubr.bf16.mxu1 %v697_v0 }
 0x11a   : > { %1871 = vmatmul.mubr.bf16.gmra.mxu1 %v698_v12 }
 0x11b   : > { %1874 = vmatprep.mubr.bf16.mxu1 %v699_v9 }
 0x122   : > { %1875 = vmatmul.mubr.bf16.gmra.mxu1 %v700_v19 }
 0x123   : > { %1878 = vmatprep.mubr.bf16.mxu1 %v701_v18 }
 0x12a   : > { %1879 = vmatmul.mubr.bf16.gmra.mxu1 %v702_v24 }
 0x1b2   : > { %v1852_v26 = vpop.f32.mrf.mxu1 }
 0x1b3   : > { %v817_v32 = vadd.f32 %v1852_v26, %v2329_v28 }
 0x1b4   : > { %v808_v27 = vpop.f32.mrf.mxu1 }
 0x1b5   : > { %v809_v30 = vadd.f32 %v2329_v28, %v808_v27  ;;  %v937_v40 = vmax.f32 %v817_v32, 0.0 }
 0x1b6   : > { %v1853_v29 = vpop.f32.mrf.mxu1 }
 0x1b7   : > { %v820_v31 = vadd.f32 %v1853_v29, %v2329_v28  ;;  %v935_v37 = vmax.f32 %v809_v30, 0.0 }
 0x1b8   : > { %v811_v33 = vpop.f32.mrf.mxu1 }
 0x1b9   : > { %v812_v34 = vadd.f32 %v2329_v28, %v811_v33  ;;  %v938_v35 = vmax.f32 %v820_v31, 0.0 }
 0x1ba   : > { %v1856_v36 = vpop.f32.mrf.mxu1 }
 0x1bb   : > { %v936_v38 = vmax.f32 %v812_v34, 0.0  ;;  %v968_v45 = vpack.c.bf16 %v938_v35, %v937_v40  ;;  %v833_v49 = vadd.f32 %v1856_v36, %v2329_v28 }
 0x1bc   : > { %v824_v43 = vpop.f32.mrf.mxu1 }
 0x1bd   : > { %v967_v41 = vpack.c.bf16 %v936_v38, %v935_v37  ;;  %v825_v47 = vadd.f32 %v2329_v28, %v824_v43  ;;  %v941_v57 = vmax.f32 %v833_v49, 0.0 }
 0x1be   : > { %v1857_v46 = vpop.f32.mrf.mxu1 }
 0x1bf   : > { %v836_v48 = vadd.f32 %v1857_v46, %v2329_v28  ;;  %1898 = vmatprep.mubr.bf16.mxu0 %v967_v41  ;;  %v939_v55 = vmax.f32 %v825_v47, 0.0 }
 0x1c0   : > { %v827_v50 = vpop.f32.mrf.mxu1  ;;  %1899 = vmatmul.mubr.bf16.vlgmr.msra.gmra.mxu0 %v968_v45 }
 0x1c1   : > { %v828_v51 = vadd.f32 %v2329_v28, %v827_v50  ;;  %v942_v52 = vmax.f32 %v836_v48, 0.0 }
 0x1c2   : > { %v1860_v54 = vpop.f32.mrf.mxu1 }
 0x1c3   : > { %v940_v56 = vmax.f32 %v828_v51, 0.0  ;;  %v970_v61 = vpack.c.bf16 %v942_v52, %v941_v57  ;;  %v849_v1 = vadd.f32 %v1860_v54, %v2329_v28 }
 0x1c4   : > { %v840_v59 = vpop.f32.mrf.mxu1 }
 0x1c5   : > { %v969_v60 = vpack.c.bf16 %v940_v56, %v939_v55  ;;  %v841_v0 = vadd.f32 %v2329_v28, %v840_v59  ;;  %v945_v6 = vmax.f32 %v849_v1, 0.0 }
 0x1c6   : > { %v1861_v63 = vpop.f32.mrf.mxu1 }
 0x1c7   : > { %v852_v58 = vadd.f32 %v1861_v63, %v2329_v28  ;;  %1902 = vmatprep.mubr.bf16.mxu0 %v969_v60  ;;  %v943_v4 = vmax.f32 %v841_v0, 0.0 }
 0x1c8   : > { %v843_v2 = vpop.f32.mrf.mxu1  ;;  %1903 = vmatmul.mubr.bf16.gmra.mxu0 %v970_v61 }
 0x1c9   : > { %v844_v39 = vadd.f32 %v2329_v28, %v843_v2  ;;  %v946_v44 = vmax.f32 %v852_v58, 0.0 }
 0x1ca   : > { %v1864_v3 = vpop.f32.mrf.mxu1 }
 0x1cb   : > { %v944_v5 = vmax.f32 %v844_v39, 0.0  ;;  %v972_v9 = vpack.c.bf16 %v946_v44, %v945_v6  ;;  %v865_v53 = vadd.f32 %v1864_v3, %v2329_v28 }
 0x1cc   : > { %v856_v7 = vpop.f32.mrf.mxu1 }
 0x1cd   : > { %v971_v8 = vpack.c.bf16 %v944_v5, %v943_v4  ;;  %v857_v11 = vadd.f32 %v2329_v28, %v856_v7  ;;  %v949_v19 = vmax.f32 %v865_v53, 0.0 }
 0x1ce   : > { %v1865_v10 = vpop.f32.mrf.mxu1 }
 0x1cf   : > { %v868_v12 = vadd.f32 %v1865_v10, %v2329_v28  ;;  %1906 = vmatprep.mubr.bf16.mxu0 %v971_v8  ;;  %v947_v17 = vmax.f32 %v857_v11, 0.0 }
 0x1d0   : > { %v859_v13 = vpop.f32.mrf.mxu1  ;;  %1907 = vmatmul.mubr.bf16.gmra.mxu0 %v972_v9 }
 0x1d1   : > { %v860_v62 = vadd.f32 %v2329_v28, %v859_v13  ;;  %v950_v15 = vmax.f32 %v868_v12, 0.0 }
 0x1d2   : > { %v1868_v16 = vpop.f32.mrf.mxu1 }
 0x1d3   : > { %v948_v18 = vmax.f32 %v860_v62, 0.0  ;;  %v974_v22 = vpack.c.bf16 %v950_v15, %v949_v19  ;;  %v881_v25 = vadd.f32 %v1868_v16, %v2329_v28  ;;  %v2366_v62 = vld [vmem:[%s2799_s6] ss:$0 sm:$0xff] }
 0x1d4   : > { %v872_v20 = vpop.f32.mrf.mxu1 }
 0x1d5   : > { %v973_v21 = vpack.c.bf16 %v948_v18, %v947_v17  ;;  %v873_v24 = vadd.f32 %v2329_v28, %v872_v20  ;;  %v953_v32 = vmax.f32 %v881_v25, 0.0 }
 0x1d6   : > { %v1869_v23 = vpop.f32.mrf.mxu1 }
 0x1d7   : > { %v884_v14 = vadd.f32 %v1869_v23, %v2329_v28  ;;  %1910 = vmatprep.mubr.bf16.mxu0 %v973_v21  ;;  %v951_v30 = vmax.f32 %v873_v24, 0.0 }
 0x1d8   : > { %v875_v42 = vpop.f32.mrf.mxu1  ;;  %1911 = vmatmul.mubr.bf16.gmra.mxu0 %v974_v22 }
 0x1d9   : > { %v876_v26 = vadd.f32 %v2329_v28, %v875_v42  ;;  %v954_v27 = vmax.f32 %v884_v14, 0.0 }
 0x1da   : > { %v1872_v29 = vpop.f32.mrf.mxu1 }
 0x1db   : > { %v952_v31 = vmax.f32 %v876_v26, 0.0  ;;  %v976_v35 = vpack.c.bf16 %v954_v27, %v953_v32  ;;  %v897_v40 = vadd.f32 %v1872_v29, %v2329_v28 }
 0x1dc   : > { %v888_v33 = vpop.f32.mrf.mxu1 }
 0x1dd   : > { %v975_v34 = vpack.c.bf16 %v952_v31, %v951_v30  ;;  %v889_v37 = vadd.f32 %v2329_v28, %v888_v33  ;;  %v957_v49 = vmax.f32 %v897_v40, 0.0 }
 0x1de   : > { %v1873_v36 = vpop.f32.mrf.mxu1 }
 0x1df   : > { %v900_v38 = vadd.f32 %v1873_v36, %v2329_v28  ;;  %1914 = vmatprep.mubr.bf16.mxu0 %v975_v34  ;;  %v955_v47 = vmax.f32 %v889_v37, 0.0 }
 0x1e0   : > { %v891_v43 = vpop.f32.mrf.mxu1  ;;  %1915 = vmatmul.mubr.bf16.gmra.mxu0 %v976_v35 }
 0x1e1   : > { %v892_v41 = vadd.f32 %v2329_v28, %v891_v43  ;;  %v958_v45 = vmax.f32 %v900_v38, 0.0 }
 0x1e2   : > { %v1876_v46 = vpop.f32.mrf.mxu1 }
 0x1e3   : > { %v956_v48 = vmax.f32 %v892_v41, 0.0  ;;  %v978_v52 = vpack.c.bf16 %v958_v45, %v957_v49  ;;  %v913_v57 = vadd.f32 %v1876_v46, %v2329_v28 }
 0x1e4   : > { %v904_v50 = vpop.f32.mrf.mxu1 }
 0x1e5   : > { %v977_v51 = vpack.c.bf16 %v956_v48, %v955_v47  ;;  %v905_v55 = vadd.f32 %v2329_v28, %v904_v50  ;;  %v961_v1 = vmax.f32 %v913_v57, 0.0 }
 0x1e6   : > { %v1877_v54 = vpop.f32.mrf.mxu1 }
 0x1e7   : > { %v916_v56 = vadd.f32 %v1877_v54, %v2329_v28  ;;  %1918 = vmatprep.mubr.bf16.mxu0 %v977_v51  ;;  %v959_v0 = vmax.f32 %v905_v55, 0.0 }
 0x1e8   : > { %v907_v59 = vpop.f32.mrf.mxu1  ;;  %1919 = vmatmul.mubr.bf16.gmra.mxu0 %v978_v52 }
 0x1e9   : > { %v908_v60 = vadd.f32 %v2329_v28, %v907_v59  ;;  %v962_v61 = vmax.f32 %v916_v56, 0.0 }
 0x1ea   : > { %v1880_v63 = vpop.f32.mrf.mxu1 }
 0x1eb   : > { %v960_v58 = vmax.f32 %v908_v60, 0.0  ;;  %v980_v44 = vpack.c.bf16 %v962_v61, %v961_v1  ;;  %v929_v6 = vadd.f32 %v1880_v63, %v2329_v28 }
 0x1ec   : > { %v920_v2 = vpop.f32.mrf.mxu1 }
 0x1ed   : > { %v979_v39 = vpack.c.bf16 %v960_v58, %v959_v0  ;;  %v921_v4 = vadd.f32 %v2329_v28, %v920_v2  ;;  %v965_v12 = vmax.f32 %v929_v6, 0.0 }
 0x1ee   : > { %v1881_v3 = vpop.f32.mrf.mxu1 }
 0x1ef   : > { %v932_v5 = vadd.f32 %v1881_v3, %v2329_v28  ;;  %1922 = vmatprep.mubr.bf16.mxu0 %v979_v39  ;;  %v963_v10 = vmax.f32 %v921_v4, 0.0 }
 0x1f0   : > { %v923_v7 = vpop.f32.mrf.mxu1  ;;  %1923 = vmatmul.mubr.bf16.gmra.mxu0 %v980_v44 }
 0x1f1   : > { %v924_v8 = vadd.f32 %v2329_v28, %v923_v7  ;;  %v966_v9 = vmax.f32 %v932_v5, 0.0 }
 0x1f3   : > { %v964_v11 = vmax.f32 %v924_v8, 0.0  ;;  %v982_v13 = vpack.c.bf16 %v966_v9, %v965_v12 }
 0x1f5   : > { %v981_v53 = vpack.c.bf16 %v964_v11, %v963_v10 }
 0x1f7   : > { %1926 = vmatprep.mubr.bf16.mxu0 %v981_v53 }
 0x1f8   : > { %1927 = vmatmul.mubr.bf16.gmra.mxu0 %v982_v13 }
 0x280   : > { %v1900_v15 = vpop.f32.mrf.mxu0 }
 0x281   : > { %v2369_v16 = vadd.f32 %v1900_v15, %v2366_v62 }
 0x282   : > { %v1088_v17 = vpop.f32.mrf.mxu0 }
 0x283   : > { %v2372_v28 = vadd.f32 %v2366_v62, %v1088_v17  ;;  %v1222_v18 = vsel %vm1215_vm3, %v2369_v16, -inf }
 0x284   : > { %1223 = vmax.xlane.f32.xlu1 %v1222_v18  ;;  %v1901_v19 = vpop.f32.mrf.mxu0 }
 0x285   : > { %v2377_v20 = vadd.f32 %v1901_v19, %v2366_v62  ;;  %v1216_v21 = vsel %vm1215_vm3, %v2372_v28, -inf }
 0x286   : > { %v1091_v22 = vpop.f32.mrf.mxu0  ;;  %1217 = vmax.xlane.f32.xlu0 %v1216_v21 }
 0x287   : > { %v2382_v23 = vadd.f32 %v2366_v62, %v1091_v22  ;;  %v1225_v24 = vsel %vm1215_vm3, %v2377_v20, -inf }
 0x288   : > { %1226 = vmax.xlane.f32.xlu1 %v1225_v24  ;;  %v1904_v14 = vpop.f32.mrf.mxu0 }
 0x289   : > { %v2387_v25 = vadd.f32 %v1904_v14, %v2366_v62  ;;  %v1219_v42 = vsel %vm1215_vm3, %v2382_v23, -inf }
 0x28a   : > { %v1104_v26 = vpop.f32.mrf.mxu0  ;;  %1220 = vmax.xlane.f32.xlu0 %v1219_v42 }
 0x28b   : > { %v2392_v29 = vadd.f32 %v2366_v62, %v1104_v26  ;;  %v1234_v31 = vsel %vm1215_vm3, %v2387_v25, -inf }
 0x28c   : > { %v1905_v27 = vpop.f32.mrf.mxu0 }
 0x28d   : > { %v2395_v30 = vadd.f32 %v1905_v27, %v2366_v62  ;;  %v1228_v37 = vsel %vm1215_vm3, %v2392_v29, -inf }
 0x28e   : > { %v1107_v32 = vpop.f32.mrf.mxu0  ;;  %1235 = vmax.xlane.f32.xlu0 %v1234_v31 }
 0x28f   : > { %v2400_v33 = vadd.f32 %v2366_v62, %v1107_v32  ;;  %v1237_v34 = vsel %vm1215_vm3, %v2395_v30, -inf }
 0x290   : > { %1238 = vmax.xlane.f32.xlu1 %v1237_v34  ;;  %v1908_v35 = vpop.f32.mrf.mxu0 }
 0x291   : > { %v2405_v36 = vadd.f32 %v1908_v35, %v2366_v62  ;;  %v1231_v40 = vsel %vm1215_vm3, %v2400_v33, -inf }
 0x292   : > { %v1120_v38 = vpop.f32.mrf.mxu0  ;;  %1229 = vmax.xlane.f32.xlu0 %v1228_v37 }
 0x293   : > { %v2412_v41 = vadd.f32 %v2366_v62, %v1120_v38  ;;  %v1246_v46 = vsel %vm1215_vm3, %v2405_v36, -inf }
 0x294   : > { %v1909_v43 = vpop.f32.mrf.mxu0  ;;  %1232 = vmax.xlane.f32.xlu1 %v1231_v40 }
 0x295   : > { %v2415_v45 = vadd.f32 %v1909_v43, %v2366_v62  ;;  %v1240_v52 = vsel %vm1215_vm3, %v2412_v41, -inf }
 0x296   : > { %v1123_v47 = vpop.f32.mrf.mxu0  ;;  %1247 = vmax.xlane.f32.xlu0 %v1246_v46 }
 0x297   : > { %v2420_v48 = vadd.f32 %v2366_v62, %v1123_v47  ;;  %v1249_v49 = vsel %vm1215_vm3, %v2415_v45, -inf }
 0x298   : > { %v1912_v50 = vpop.f32.mrf.mxu0  ;;  %1250 = vmax.xlane.f32.xlu1 %v1249_v49 }
 0x299   : > { %v2425_v51 = vadd.f32 %v1912_v50, %v2366_v62  ;;  %v1243_v55 = vsel %vm1215_vm3, %v2420_v48, -inf }
 0x29a   : > { %v1136_v54 = vpop.f32.mrf.mxu0  ;;  %1241 = vmax.xlane.f32.xlu0 %v1240_v52 }
 0x29b   : > { %v2432_v57 = vadd.f32 %v2366_v62, %v1136_v54  ;;  %v1258_v60 = vsel %vm1215_vm3, %v2425_v51, -inf }
 0x29c   : > { %v1913_v56 = vpop.f32.mrf.mxu0  ;;  %1244 = vmax.xlane.f32.xlu1 %v1243_v55 }
 0x29d   : > { %v2435_v59 = vadd.f32 %v1913_v56, %v2366_v62  ;;  %v1252_v2 = vsel %vm1215_vm3, %v2432_v57, -inf }
 0x29e   : > { %v1139_v61 = vpop.f32.mrf.mxu0  ;;  %1259 = vmax.xlane.f32.xlu0 %v1258_v60 }
 0x29f   : > { %v2440_v63 = vadd.f32 %v2366_v62, %v1139_v61  ;;  %v1261_v0 = vsel %vm1215_vm3, %v2435_v59, -inf }
 0x2a0   : > { %v1916_v58 = vpop.f32.mrf.mxu0  ;;  %1262 = vmax.xlane.f32.xlu1 %v1261_v0 }
 0x2a1   : > { %v2445_v1 = vadd.f32 %v1916_v58, %v2366_v62  ;;  %v1255_v44 = vsel %vm1215_vm3, %v2440_v63, -inf }
 0x2a2   : > { %v1152_v39 = vpop.f32.mrf.mxu0  ;;  %1253 = vmax.xlane.f32.xlu0 %v1252_v2 }
 0x2a3   : > { %v2452_v4 = vadd.f32 %v2366_v62, %v1152_v39  ;;  %v1270_v6 = vsel %vm1215_vm3, %v2445_v1, -inf }
 0x2a4   : > { %v1917_v3 = vpop.f32.mrf.mxu0  ;;  %1256 = vmax.xlane.f32.xlu1 %v1255_v44 }
 0x2a5   : > { %v2455_v5 = vadd.f32 %v1917_v3, %v2366_v62  ;;  %v1264_v12 = vsel %vm1215_vm3, %v2452_v4, -inf }
 0x2a6   : > { %v1155_v7 = vpop.f32.mrf.mxu0  ;;  %1271 = vmax.xlane.f32.xlu0 %v1270_v6 }
 0x2a7   : > { %v2460_v8 = vadd.f32 %v2366_v62, %v1155_v7  ;;  %v1273_v9 = vsel %vm1215_vm3, %v2455_v5, -inf }
 0x2a8   : > { %v1920_v10 = vpop.f32.mrf.mxu0  ;;  %1274 = vmax.xlane.f32.xlu1 %v1273_v9 }
 0x2a9   : > { %v2465_v11 = vadd.f32 %v1920_v10, %v2366_v62  ;;  %v1267_v13 = vsel %vm1215_vm3, %v2460_v8, -inf }
 0x2aa   : > { %v1168_v53 = vpop.f32.mrf.mxu0  ;;  %1265 = vmax.xlane.f32.xlu0 %v1264_v12 }
 0x2ab   : > { %v2472_v17 = vadd.f32 %v2366_v62, %v1168_v53  ;;  %v1282_v19 = vsel %vm1215_vm3, %v2465_v11, -inf }
 0x2ac   : > { %v1921_v15 = vpop.f32.mrf.mxu0  ;;  %1268 = vmax.xlane.f32.xlu1 %v1267_v13 }
 0x2ad   : > { %v2475_v18 = vadd.f32 %v1921_v15, %v2366_v62  ;;  %v1276_v26 = vsel %vm1215_vm3, %v2472_v17, -inf }
 0x2ae   : > { %v1171_v21 = vpop.f32.mrf.mxu0  ;;  %1283 = vmax.xlane.f32.xlu0 %v1282_v19 }
 0x2af   : > { %v2480_v22 = vadd.f32 %v2366_v62, %v1171_v21  ;;  %v1285_v24 = vsel %vm1215_vm3, %v2475_v18, -inf }
 0x2b0   : > { %v1924_v14 = vpop.f32.mrf.mxu0  ;;  %1286 = vmax.xlane.f32.xlu1 %v1285_v24 }
 0x2b1   : > { %v2485_v42 = vadd.f32 %v1924_v14, %v2366_v62  ;;  %v1279_v31 = vsel %vm1215_vm3, %v2480_v22, -inf }
 0x2b2   : > { %v1184_v27 = vpop.f32.mrf.mxu0  ;;  %1277 = vmax.xlane.f32.xlu0 %v1276_v26 }
 0x2b3   : > { %v2492_v34 = vadd.f32 %v2366_v62, %v1184_v27  ;;  %v1294_v37 = vsel %vm1215_vm3, %v2485_v42, -inf }
 0x2b4   : > { %v1925_v32 = vpop.f32.mrf.mxu0  ;;  %1280 = vmax.xlane.f32.xlu1 %v1279_v31 }
 0x2b5   : > { %v2495_v35 = vadd.f32 %v1925_v32, %v2366_v62  ;;  %v1288_v47 = vsel %vm1215_vm3, %v2492_v34, -inf }
 0x2b6   : > { %v1187_v38 = vpop.f32.mrf.mxu0  ;;  %1295 = vmax.xlane.f32.xlu0 %v1294_v37 }
 0x2b7   : > { %v2500_v40 = vadd.f32 %v2366_v62, %v1187_v38  ;;  %v1297_v43 = vsel %vm1215_vm3, %v2495_v35, -inf }
 0x2b8   : > { %v1928_v46 = vpop.f32.mrf.mxu0  ;;  %1298 = vmax.xlane.f32.xlu1 %v1297_v43 }
 0x2b9   : > { %v1291_v52 = vsel %vm1215_vm3, %v2500_v40, -inf  ;;  %v2512_v55 = vadd.f32 %v1928_v46, %v2366_v62 }
 0x2ba   : > { %v1200_v49 = vpop.f32.mrf.mxu0  ;;  %1289 = vmax.xlane.f32.xlu0 %v1288_v47 }
 0x2bb   : > { %v2507_v50 = vadd.f32 %v2366_v62, %v1200_v49  ;;  %v1306_v2 = vsel %vm1215_vm3, %v2512_v55, -inf }
 0x2bc   : > { %v1929_v54 = vpop.f32.mrf.mxu0  ;;  %1292 = vmax.xlane.f32.xlu1 %v1291_v52 }
 0x2bd   : > { %v1300_v56 = vsel %vm1215_vm3, %v2507_v50, -inf  ;;  %v2520_v0 = vadd.f32 %v1929_v54, %v2366_v62 }
 0x2be   : > { %v1203_v60 = vpop.f32.mrf.mxu0  ;;  %1301 = vmax.xlane.f32.xlu0 %v1300_v56 }
 0x2bf   : > { %v2517_v61 = vadd.f32 %v2366_v62, %v1203_v60  ;;  %v1309_v39 = vsel %vm1215_vm3, %v2520_v0, -inf }
 0x2c1   : > { %v1303_v58 = vsel %vm1215_vm3, %v2517_v61, -inf }
 0x2c2   : > { %1304 = vmax.xlane.f32.xlu1 %v1303_v58  ;;  %1307 = vmax.xlane.f32.xlu0 %v1306_v2 }
 0x2c6   : > { %1310 = vmax.xlane.f32.xlu1 %v1309_v39 }
 0x30d   : > { %v1224_v44 = vpop.xlane.xlu1 %1223 }
 0x30e   : > { %v1314_v3 = vsub.f32 %v2369_v16, %v1224_v44 }
 0x30f   : > { %v1218_v6 = vpop.xlane.xlu0 %1217 }
 0x310   : > { %v1348_v7 = vmul.f32 1.442695, %v1314_v3  ;;  %v1312_v62 = vsub.f32 %v2372_v28, %v1218_v6 }
 0x311   : > { %v1227_v9 = vpop.xlane.xlu1 %1226 }
 0x312   : > { %1986 = vpow2.f32 %v1348_v7  ;;  %v1344_v10 = vmul.f32 1.442695, %v1312_v62  ;;  %v1315_v12 = vsub.f32 %v2377_v20, %v1227_v9 }
 0x313   : > { %v1221_v53 = vpop.xlane.xlu0 %1220 }
 0x314   : > { %1988 = vpow2.f32 %v1344_v10  ;;  %v1350_v13 = vmul.f32 1.442695, %v1315_v12  ;;  %v1313_v15 = vsub.f32 %v2382_v23, %v1221_v53 }
 0x316   : > { %1990 = vpow2.f32 %v1350_v13  ;;  %v1346_v19 = vmul.f32 1.442695, %v1313_v15 }
 0x317   : > { %v1236_v21 = vpop.xlane.xlu0 %1235 }
 0x318   : > { %1992 = vpow2.f32 %v1346_v19  ;;  %v1318_v16 = vsub.f32 %v2387_v25, %v1236_v21 }
 0x319   : > { %v1239_v24 = vpop.xlane.xlu1 %1238 }
 0x31a   : > { %v1356_v14 = vmul.f32 1.442695, %v1318_v16  ;;  %v1319_v28 = vsub.f32 %v2395_v30, %v1239_v24 }
 0x31b   : > { %v1230_v26 = vpop.xlane.xlu0 %1229 }
 0x31c   : > { %1994 = vpow2.f32 %v1356_v14  ;;  %v1358_v27 = vmul.f32 1.442695, %v1319_v28  ;;  %v1316_v20 = vsub.f32 %v2392_v29, %v1230_v26 }
 0x31d   : > { %v1233_v31 = vpop.xlane.xlu1 %1232 }
 0x31e   : > { %1996 = vpow2.f32 %v1358_v27  ;;  %v1352_v32 = vmul.f32 1.442695, %v1316_v20  ;;  %v1317_v23 = vsub.f32 %v2400_v33, %v1233_v31 }
 0x31f   : > { %v2536_v37 = vpop.eup %1986  ;;  %v1248_v38 = vpop.xlane.xlu0 %1247 }
 0x320   : > { %1998 = vpow2.f32 %v1352_v32  ;;  %v1354_v43 = vmul.f32 1.442695, %v1317_v23  ;;  %v1322_v25 = vsub.f32 %v2405_v36, %v1248_v38  ;;  %v1414_v30 = vsel %vm1215_vm3, %v2536_v37, 0.0 }
 0x321   : > { %v2541_v46 = vpop.eup %1988  ;;  %v1251_v47 = vpop.xlane.xlu1 %1250  ;;  %1415 = vadd.xlane.f32.xlu0 %v1414_v30 }
 0x322   : > { %2000 = vpow2.f32 %v1354_v43  ;;  %v1364_v29 = vmul.f32 1.442695, %v1322_v25  ;;  %v1323_v49 = vsub.f32 %v2415_v45, %v1251_v47  ;;  %v1408_v54 = vsel %vm1215_vm3, %v2541_v46, 0.0 }
 0x323   : > { %v2544_v52 = vpop.eup %1990  ;;  %v1242_v33 = vpop.xlane.xlu0 %1241 }
 0x324   : > { %2002 = vpow2.f32 %v1364_v29  ;;  %v1366_v56 = vmul.f32 1.442695, %v1323_v49  ;;  %v1320_v36 = vsub.f32 %v2412_v41, %v1242_v33  ;;  %v1417_v60 = vsel %vm1215_vm3, %v2544_v52, 0.0 }
 0x325   : > { %v2551_v58 = vpop.eup %1992  ;;  %1418 = vadd.xlane.f32.xlu1 %v1417_v60  ;;  %v1245_v2 = vpop.xlane.xlu1 %1244  ;;  %1409 = vadd.xlane.f32.xlu0 %v1408_v54 }
 0x326   : > { %2004 = vpow2.f32 %v1366_v56  ;;  %v1360_v45 = vmul.f32 1.442695, %v1320_v36  ;;  %v1321_v39 = vsub.f32 %v2420_v48, %v1245_v2  ;;  %v1411_v41 = vsel %vm1215_vm3, %v2551_v58, 0.0 }
 0x327   : > { %v1260_v44 = vpop.xlane.xlu0 %1259 }
 0x328   : > { %2006 = vpow2.f32 %v1360_v45  ;;  %v1362_v3 = vmul.f32 1.442695, %v1321_v39  ;;  %v1326_v6 = vsub.f32 %v2425_v51, %v1260_v44 }
 0x329   : > { %v2557_v7 = vpop.eup %1994  ;;  %v1263_v62 = vpop.xlane.xlu1 %1262  ;;  %1412 = vadd.xlane.f32.xlu1 %v1411_v41 }
 0x32a   : > { %2008 = vpow2.f32 %v1362_v3  ;;  %v1372_v9 = vmul.f32 1.442695, %v1326_v6  ;;  %v1327_v10 = vsub.f32 %v2435_v59, %v1263_v62  ;;  %v1426_v12 = vsel %vm1215_vm3, %v2557_v7, 0.0 }
 0x32b   : > { %v2562_v48 = vpop.eup %1996  ;;  %1427 = vadd.xlane.f32.xlu0 %v1426_v12  ;;  %v1254_v53 = vpop.xlane.xlu0 %1253 }
 0x32c   : > { %2010 = vpow2.f32 %v1372_v9  ;;  %v1374_v51 = vmul.f32 1.442695, %v1327_v10  ;;  %v1324_v13 = vsub.f32 %v2432_v57, %v1254_v53  ;;  %v1429_v15 = vsel %vm1215_vm3, %v2562_v48, 0.0 }
 0x32d   : > { %v2567_v19 = vpop.eup %1998  ;;  %v1257_v21 = vpop.xlane.xlu1 %1256  ;;  %1430 = vadd.xlane.f32.xlu1 %v1429_v15 }
 0x32e   : > { %2012 = vpow2.f32 %v1374_v51  ;;  %v1368_v59 = vmul.f32 1.442695, %v1324_v13  ;;  %v1325_v16 = vsub.f32 %v2440_v63, %v1257_v21  ;;  %v1420_v24 = vsel %vm1215_vm3, %v2567_v19, 0.0 }
 0x32f   : > { %v2572_v14 = vpop.eup %2000  ;;  %1421 = vadd.xlane.f32.xlu0 %v1420_v24  ;;  %v1272_v28 = vpop.xlane.xlu0 %1271 }
 0x330   : > { %2014 = vpow2.f32 %v1368_v59  ;;  %v1370_v57 = vmul.f32 1.442695, %v1325_v16  ;;  %v1330_v26 = vsub.f32 %v2445_v1, %v1272_v28  ;;  %v1423_v27 = vsel %vm1215_vm3, %v2572_v14, 0.0 }
 0x331   : > { %v2577_v20 = vpop.eup %2002  ;;  %v1275_v31 = vpop.xlane.xlu1 %1274  ;;  %1424 = vadd.xlane.f32.xlu1 %v1423_v27 }
 0x332   : > { %2016 = vpow2.f32 %v1370_v57  ;;  %v1380_v63 = vmul.f32 1.442695, %v1330_v26  ;;  %v1331_v32 = vsub.f32 %v2455_v5, %v1275_v31  ;;  %v1438_v23 = vsel %vm1215_vm3, %v2577_v20, 0.0 }
 0x333   : > { %v2582_v38 = vpop.eup %2004  ;;  %1439 = vadd.xlane.f32.xlu0 %v1438_v23  ;;  %v1266_v43 = vpop.xlane.xlu0 %1265 }
 0x334   : > { %2018 = vpow2.f32 %v1380_v63  ;;  %v1382_v1 = vmul.f32 1.442695, %v1331_v32  ;;  %v1328_v25 = vsub.f32 %v2452_v4, %v1266_v43  ;;  %v1441_v30 = vsel %vm1215_vm3, %v2582_v38, 0.0 }
 0x335   : > { %v2587_v47 = vpop.eup %2006  ;;  %v1269_v29 = vpop.xlane.xlu1 %1268  ;;  %1442 = vadd.xlane.f32.xlu1 %v1441_v30 }
 0x336   : > { %2020 = vpow2.f32 %v1382_v1  ;;  %v1376_v5 = vmul.f32 1.442695, %v1328_v25  ;;  %v1329_v49 = vsub.f32 %v2460_v8, %v1269_v29  ;;  %v1432_v33 = vsel %vm1215_vm3, %v2587_v47, 0.0 }
 0x337   : > { %v2592_v54 = vpop.eup %2008  ;;  %1433 = vadd.xlane.f32.xlu0 %v1432_v33  ;;  %v1284_v56 = vpop.xlane.xlu0 %1283 }
 0x338   : > { %2022 = vpow2.f32 %v1376_v5  ;;  %v1378_v4 = vmul.f32 1.442695, %v1329_v49  ;;  %v1334_v36 = vsub.f32 %v2465_v11, %v1284_v56  ;;  %v1435_v60 = vsel %vm1215_vm3, %v2592_v54, 0.0 }
 0x339   : > { %v2597_v2 = vpop.eup %2010  ;;  %v1287_v45 = vpop.xlane.xlu1 %1286  ;;  %1436 = vadd.xlane.f32.xlu1 %v1435_v60 }
 0x33a   : > { %2024 = vpow2.f32 %v1378_v4  ;;  %v1388_v8 = vmul.f32 1.442695, %v1334_v36  ;;  %v1335_v39 = vsub.f32 %v2475_v18, %v1287_v45  ;;  %v1450_v44 = vsel %vm1215_vm3, %v2597_v2, 0.0 }
 0x33b   : > { %v2602_v3 = vpop.eup %2012  ;;  %1451 = vadd.xlane.f32.xlu0 %v1450_v44  ;;  %v1278_v6 = vpop.xlane.xlu0 %1277 }
 0x33c   : > { %2026 = vpow2.f32 %v1388_v8  ;;  %v1390_v11 = vmul.f32 1.442695, %v1335_v39  ;;  %v1332_v41 = vsub.f32 %v2472_v17, %v1278_v6  ;;  %v1453_v62 = vsel %vm1215_vm3, %v2602_v3, 0.0 }
 0x33d   : > { %v2607_v9 = vpop.eup %2014  ;;  %v1281_v10 = vpop.xlane.xlu1 %1280  ;;  %1454 = vadd.xlane.f32.xlu1 %v1453_v62 }
 0x33e   : > { %2028 = vpow2.f32 %v1390_v11  ;;  %v1384_v18 = vmul.f32 1.442695, %v1332_v41  ;;  %v1333_v12 = vsub.f32 %v2480_v22, %v1281_v10  ;;  %v1444_v53 = vsel %vm1215_vm3, %v2607_v9, 0.0 }
 0x33f   : > { %v2612_v51 = vpop.eup %2016  ;;  %1445 = vadd.xlane.f32.xlu0 %v1444_v53  ;;  %v1296_v13 = vpop.xlane.xlu0 %1295 }
 0x340   : > { %2030 = vpow2.f32 %v1384_v18  ;;  %v1386_v17 = vmul.f32 1.442695, %v1333_v12  ;;  %v1338_v15 = vsub.f32 %v2485_v42, %v1296_v13  ;;  %v1447_v21 = vsel %vm1215_vm3, %v2612_v51, 0.0 }
 0x341   : > { %v2617_v59 = vpop.eup %2018  ;;  %v1299_v16 = vpop.xlane.xlu1 %1298  ;;  %1448 = vadd.xlane.f32.xlu1 %v1447_v21 }
 0x342   : > { %2032 = vpow2.f32 %v1386_v17  ;;  %v1396_v22 = vmul.f32 1.442695, %v1338_v15  ;;  %v1339_v24 = vsub.f32 %v2495_v35, %v1299_v16  ;;  %v1462_v28 = vsel %vm1215_vm3, %v2617_v59, 0.0 }
 0x343   : > { %v2622_v57 = vpop.eup %2020  ;;  %1463 = vadd.xlane.f32.xlu0 %v1462_v28  ;;  %v1290_v26 = vpop.xlane.xlu0 %1289 }
 0x344   : > { %2034 = vpow2.f32 %v1396_v22  ;;  %v1398_v42 = vmul.f32 1.442695, %v1339_v24  ;;  %v1336_v27 = vsub.f32 %v2492_v34, %v1290_v26  ;;  %v1465_v31 = vsel %vm1215_vm3, %v2622_v57, 0.0 }
 0x345   : > { %v2627_v63 = vpop.eup %2022  ;;  %v1293_v32 = vpop.xlane.xlu1 %1292  ;;  %1466 = vadd.xlane.f32.xlu1 %v1465_v31 }
 0x346   : > { %2036 = vpow2.f32 %v1398_v42  ;;  %v1392_v35 = vmul.f32 1.442695, %v1336_v27  ;;  %v1337_v23 = vsub.f32 %v2500_v40, %v1293_v32  ;;  %v1456_v43 = vsel %vm1215_vm3, %v2627_v63, 0.0 }
 0x347   : > { %v2632_v1 = vpop.eup %2024  ;;  %1457 = vadd.xlane.f32.xlu0 %v1456_v43  ;;  %v1302_v25 = vpop.xlane.xlu0 %1301 }
 0x348   : > { %2038 = vpow2.f32 %v1392_v35  ;;  %v1394_v34 = vmul.f32 1.442695, %v1337_v23  ;;  %v1340_v30 = vsub.f32 %v2507_v50, %v1302_v25  ;;  %v1459_v29 = vsel %vm1215_vm3, %v2632_v1, 0.0 }
 0x349   : > { %v2637_v5 = vpop.eup %2026  ;;  %1460 = vadd.xlane.f32.xlu1 %v1459_v29 }
 0x34a   : > { %2040 = vpow2.f32 %v1394_v34  ;;  %v1400_v49 = vmul.f32 1.442695, %v1340_v30  ;;  %v1474_v40 = vsel %vm1215_vm3, %v2637_v5, 0.0 }
 0x34b   : > { %v2641_v33 = vpop.eup %2028  ;;  %v1305_v56 = vpop.xlane.xlu1 %1304  ;;  %1475 = vadd.xlane.f32.xlu0 %v1474_v40 }
 0x34c   : > { %v1308_v4 = vpop.xlane.xlu0 %1307  ;;  %2042 = vpow2.f32 %v1400_v49  ;;  %v1341_v36 = vsub.f32 %v2517_v61, %v1305_v56  ;;  %v1477_v60 = vsel %vm1215_vm3, %v2641_v33, 0.0 }
 0x34d   : > { %v1342_v50 = vsub.f32 %v2512_v55, %v1308_v4  ;;  %v2647_v45 = vpop.eup %2030  ;;  %1478 = vadd.xlane.f32.xlu1 %v1477_v60 }
 0x34e   : > { %v1402_v8 = vmul.f32 1.442695, %v1341_v36  ;;  %v1468_v44 = vsel %vm1215_vm3, %v2647_v45, 0.0 }
 0x34f   : > { %v1404_v39 = vmul.f32 1.442695, %v1342_v50  ;;  %v2651_v6 = vpop.eup %2032  ;;  %v1311_v11 = vpop.xlane.xlu1 %1310  ;;  %1469 = vadd.xlane.f32.xlu0 %v1468_v44 }
 0x350   : > { %2044 = vpow2.f32 %v1402_v8  ;;  %v1343_v61 = vsub.f32 %v2520_v0, %v1311_v11  ;;  %v1471_v55 = vsel %vm1215_vm3, %v2651_v6, 0.0 }
 0x351   : > { %v2656_v41 = vpop.eup %2034  ;;  %2046 = vpow2.f32 %v1404_v39  ;;  %1472 = vadd.xlane.f32.xlu1 %v1471_v55 }
 0x352   : > { %v1406_v62 = vmul.f32 1.442695, %v1343_v61  ;;  %v1486_v10 = vsel %vm1215_vm3, %v2656_v41, 0.0 }
 0x353   : > { %v2660_v18 = vpop.eup %2036  ;;  %1487 = vadd.xlane.f32.xlu0 %v1486_v10 }
 0x354   : > { %2048 = vpow2.f32 %v1406_v62  ;;  %v1489_v12 = vsel %vm1215_vm3, %v2660_v18, 0.0 }
 0x355   : > { %v2664_v53 = vpop.eup %2038  ;;  %1490 = vadd.xlane.f32.xlu1 %v1489_v12 }
 0x356   : > { %v1480_v0 = vsel %vm1215_vm3, %v2664_v53, 0.0 }
 0x357   : > { %v2668_v13 = vpop.eup %2040  ;;  %1481 = vadd.xlane.f32.xlu0 %v1480_v0 }
 0x358   : > { %v1483_v17 = vsel %vm1215_vm3, %v2668_v13, 0.0 }
 0x359   : > { %v2672_v15 = vpop.eup %2042  ;;  %1484 = vadd.xlane.f32.xlu1 %v1483_v17 }
 0x35a   : > { %v1492_v21 = vsel %vm1215_vm3, %v2672_v15, 0.0 }
 0x35b   : > { %1493 = vadd.xlane.f32.xlu0 %v1492_v21 }
 0x35d   : > { %v2676_v16 = vpop.eup %2044 }
 0x35e   : > { %v2678_v22 = vpop.eup %2046  ;;  %v1495_v24 = vsel %vm1215_vm3, %v2676_v16, 0.0 }
 0x35f   : > { %1496 = vadd.xlane.f32.xlu1 %v1495_v24  ;;  %v1498_v28 = vsel %vm1215_vm3, %v2678_v22, 0.0 }
 0x360   : > { %1499 = vadd.xlane.f32.xlu0 %v1498_v28 }
 0x361   : > { %v2684_v26 = vpop.eup %2048 }
 0x362   : > { %v1501_v42 = vsel %vm1215_vm3, %v2684_v26, 0.0 }
 0x363   : > { %1502 = vadd.xlane.f32.xlu1 %v1501_v42 }
 0x3aa   : > { %v1416_v27 = vpop.xlane.xlu0 %1415 }
 0x3ab   : > { %2050 = vrcp.f32 %v1416_v27 }
 0x3ae   : > { %v1419_v31 = vpop.xlane.xlu1 %1418  ;;  %v1410_v32 = vpop.xlane.xlu0 %1409 }
 0x3af   : > { %2052 = vrcp.f32 %v1419_v31 }
 0x3b0   : > { %2054 = vrcp.f32 %v1410_v32 }
 0x3b2   : > { %v1413_v35 = vpop.xlane.xlu1 %1412 }
 0x3b3   : > { %2056 = vrcp.f32 %v1413_v35 }
 0x3b4   : > { %v1428_v23 = vpop.xlane.xlu0 %1427 }
 0x3b5   : > { %2058 = vrcp.f32 %v1428_v23 }
 0x3b6   : > { %v1431_v43 = vpop.xlane.xlu1 %1430 }
 0x3b7   : > { %2060 = vrcp.f32 %v1431_v43 }
 0x3b8   : > { %v2051_v25 = vpop.eup %2050  ;;  %v1422_v34 = vpop.xlane.xlu0 %1421 }
 0x3b9   : > { %v1509_v30 = vmul.f32 %v2051_v25, %v2536_v37  ;;  %2062 = vrcp.f32 %v1422_v34 }
 0x3ba   : > { %v1425_v29 = vpop.xlane.xlu1 %1424 }
 0x3bb   : > { %1570 = vst.msk [vmem:[%s2692_s17 + $0x10] sm:$0xff] %vm1215_vm3, %v1509_v30  ;;  %2064 = vrcp.f32 %v1425_v29 }
 0x3bc   : > { %v2053_v49 = vpop.eup %2052  ;;  %v1440_v40 = vpop.xlane.xlu0 %1439 }
 0x3bd   : > { %v2055_v56 = vpop.eup %2054  ;;  %v1511_v4 = vmul.f32 %v2053_v49, %v2544_v52  ;;  %2066 = vrcp.f32 %v1440_v40 }
 0x3be   : > { %v1505_v36 = vmul.f32 %v2055_v56, %v2541_v46  ;;  %v1443_v50 = vpop.xlane.xlu1 %1442 }
 0x3bf   : > { %1571 = vst.msk [vmem:[%s2692_s17 + $0x18] sm:$0xff] %vm1215_vm3, %v1511_v4  ;;  %2068 = vrcp.f32 %v1443_v50 }
 0x3c0   : > { %v2057_v37 = vpop.eup %2056  ;;  %1568 = vst.msk [vmem:[%s2692_s17] sm:$0xff] %vm1215_vm3, %v1505_v36  ;;  %v1434_v60 = vpop.xlane.xlu0 %1433 }
 0x3c1   : > { %v1507_v8 = vmul.f32 %v2057_v37, %v2551_v58  ;;  %2070 = vrcp.f32 %v1434_v60 }
 0x3c2   : > { %v2059_v39 = vpop.eup %2058  ;;  %v1437_v44 = vpop.xlane.xlu1 %1436 }
 0x3c3   : > { %1569 = vst.msk [vmem:[%s2692_s17 + $0x8] sm:$0xff] %vm1215_vm3, %v1507_v8  ;;  %v1517_v46 = vmul.f32 %v2059_v39, %v2557_v7  ;;  %2072 = vrcp.f32 %v1437_v44 }
 0x3c4   : > { %v2061_v52 = vpop.eup %2060  ;;  %v1452_v11 = vpop.xlane.xlu0 %1451 }
 0x3c5   : > { %1574 = vst.msk [vmem:[%s2692_s17 + $0x30] sm:$0xff] %vm1215_vm3, %v1517_v46  ;;  %v1519_v61 = vmul.f32 %v2061_v52, %v2562_v48  ;;  %2074 = vrcp.f32 %v1452_v11 }
 0x3c6   : > { %v2063_v55 = vpop.eup %2062  ;;  %v1455_v62 = vpop.xlane.xlu1 %1454 }
 0x3c7   : > { %1575 = vst.msk [vmem:[%s2692_s17 + $0x38] sm:$0xff] %vm1215_vm3, %v1519_v61  ;;  %v1513_v58 = vmul.f32 %v2063_v55, %v2567_v19  ;;  %2076 = vrcp.f32 %v1455_v62 }
 0x3c8   : > { %v2065_v10 = vpop.eup %2064  ;;  %v1446_v12 = vpop.xlane.xlu0 %1445 }
 0x3c9   : > { %1572 = vst.msk [vmem:[%s2692_s17 + $0x20] sm:$0xff] %vm1215_vm3, %v1513_v58  ;;  %v1515_v7 = vmul.f32 %v2065_v10, %v2572_v14  ;;  %2078 = vrcp.f32 %v1446_v12 }
 0x3ca   : > { %v2067_v0 = vpop.eup %2066  ;;  %v1449_v17 = vpop.xlane.xlu1 %1448 }
 0x3cb   : > { %1573 = vst.msk [vmem:[%s2692_s17 + $0x28] sm:$0xff] %vm1215_vm3, %v1515_v7  ;;  %v1525_v48 = vmul.f32 %v2067_v0, %v2577_v20  ;;  %2080 = vrcp.f32 %v1449_v17 }
 0x3cc   : > { %v2069_v21 = vpop.eup %2068  ;;  %v1464_v24 = vpop.xlane.xlu0 %1463 }
 0x3cd   : > { %1578 = vst.msk [vmem:[%s2692_s17 + $0x50] sm:$0xff] %vm1215_vm3, %v1525_v48  ;;  %v1527_v19 = vmul.f32 %v2069_v21, %v2582_v38  ;;  %2082 = vrcp.f32 %v1464_v24 }
 0x3ce   : > { %v2071_v28 = vpop.eup %2070  ;;  %v1467_v42 = vpop.xlane.xlu1 %1466 }
 0x3cf   : > { %1579 = vst.msk [vmem:[%s2692_s17 + $0x58] sm:$0xff] %vm1215_vm3, %v1527_v19  ;;  %v1521_v14 = vmul.f32 %v2071_v28, %v2587_v47  ;;  %2084 = vrcp.f32 %v1467_v42 }
 0x3d0   : > { %v2073_v27 = vpop.eup %2072  ;;  %v1458_v31 = vpop.xlane.xlu0 %1457 }
 0x3d1   : > { %1576 = vst.msk [vmem:[%s2692_s17 + $0x40] sm:$0xff] %vm1215_vm3, %v1521_v14  ;;  %v1523_v20 = vmul.f32 %v2073_v27, %v2592_v54  ;;  %2086 = vrcp.f32 %v1458_v31 }
 0x3d2   : > { %v2075_v32 = vpop.eup %2074  ;;  %v1461_v35 = vpop.xlane.xlu1 %1460 }
 0x3d3   : > { %1577 = vst.msk [vmem:[%s2692_s17 + $0x48] sm:$0xff] %vm1215_vm3, %v1523_v20  ;;  %v1533_v38 = vmul.f32 %v2075_v32, %v2597_v2  ;;  %2088 = vrcp.f32 %v1461_v35 }
 0x3d4   : > { %v2077_v23 = vpop.eup %2076  ;;  %v1476_v43 = vpop.xlane.xlu0 %1475 }
 0x3d5   : > { %1582 = vst.msk [vmem:[%s2692_s17 + $0x70] sm:$0xff] %vm1215_vm3, %v1533_v38  ;;  %v1535_v47 = vmul.f32 %v2077_v23, %v2602_v3  ;;  %2090 = vrcp.f32 %v1476_v43 }
 0x3d6   : > { %v2079_v25 = vpop.eup %2078  ;;  %v1479_v34 = vpop.xlane.xlu1 %1478 }
 0x3d7   : > { %1583 = vst.msk [vmem:[%s2692_s17 + $0x78] sm:$0xff] %vm1215_vm3, %v1535_v47  ;;  %v1529_v54 = vmul.f32 %v2079_v25, %v2607_v9  ;;  %2092 = vrcp.f32 %v1479_v34 }
 0x3d8   : > { %v2081_v30 = vpop.eup %2080  ;;  %v1470_v29 = vpop.xlane.xlu0 %1469 }
 0x3d9   : > { %1580 = vst.msk [vmem:[%s2692_s17 + $0x60] sm:$0xff] %vm1215_vm3, %v1529_v54  ;;  %v1531_v2 = vmul.f32 %v2081_v30, %v2612_v51  ;;  %2094 = vrcp.f32 %v1470_v29 }
 0x3da   : > { %v2083_v49 = vpop.eup %2082  ;;  %v1473_v40 = vpop.xlane.xlu1 %1472 }
 0x3db   : > { %1581 = vst.msk [vmem:[%s2692_s17 + $0x68] sm:$0xff] %vm1215_vm3, %v1531_v2  ;;  %v1541_v3 = vmul.f32 %v2083_v49, %v2617_v59  ;;  %2096 = vrcp.f32 %v1473_v40 }
 0x3dc   : > { %v2085_v56 = vpop.eup %2084  ;;  %v1488_v4 = vpop.xlane.xlu0 %1487 }
 0x3dd   : > { %1586 = vst.msk [vmem:[%s2692_s17 + $0x90] sm:$0xff] %vm1215_vm3, %v1541_v3  ;;  %v1543_v9 = vmul.f32 %v2085_v56, %v2622_v57  ;;  %2098 = vrcp.f32 %v1488_v4 }
 0x3de   : > { %v2087_v36 = vpop.eup %2086  ;;  %v1491_v50 = vpop.xlane.xlu1 %1490 }
 0x3df   : > { %1587 = vst.msk [vmem:[%s2692_s17 + $0x98] sm:$0xff] %vm1215_vm3, %v1543_v9  ;;  %v1537_v51 = vmul.f32 %v2087_v36, %v2627_v63  ;;  %2100 = vrcp.f32 %v1491_v50 }
 0x3e0   : > { %v2089_v37 = vpop.eup %2088  ;;  %v1482_v59 = vpop.xlane.xlu0 %1481 }
 0x3e1   : > { %1584 = vst.msk [vmem:[%s2692_s17 + $0x80] sm:$0xff] %vm1215_vm3, %v1537_v51  ;;  %v1539_v60 = vmul.f32 %v2089_v37, %v2632_v1  ;;  %2102 = vrcp.f32 %v1482_v59 }
 0x3e2   : > { %v2091_v8 = vpop.eup %2090  ;;  %v1485_v57 = vpop.xlane.xlu1 %1484 }
 0x3e3   : > { %1585 = vst.msk [vmem:[%s2692_s17 + $0x88] sm:$0xff] %vm1215_vm3, %v1539_v60  ;;  %v1549_v39 = vmul.f32 %v2091_v8, %v2637_v5  ;;  %2104 = vrcp.f32 %v1485_v57 }
 0x3e4   : > { %v2093_v44 = vpop.eup %2092  ;;  %v1494_v63 = vpop.xlane.xlu0 %1493 }
 0x3e5   : > { %1590 = vst.msk [vmem:[%s2692_s17 + $0xb0] sm:$0xff] %vm1215_vm3, %v1549_v39  ;;  %v1551_v46 = vmul.f32 %v2093_v44, %v2641_v33  ;;  %2106 = vrcp.f32 %v1494_v63 }
 0x3e6   : > { %v2095_v52 = vpop.eup %2094 }
 0x3e7   : > { %1591 = vst.msk [vmem:[%s2692_s17 + $0xb8] sm:$0xff] %vm1215_vm3, %v1551_v46  ;;  %v1545_v1 = vmul.f32 %v2095_v52, %v2647_v45 }
 0x3e8   : > { %v2097_v11 = vpop.eup %2096  ;;  %v1497_v61 = vpop.xlane.xlu1 %1496 }
 0x3e9   : > { %1588 = vst.msk [vmem:[%s2692_s17 + $0xa0] sm:$0xff] %vm1215_vm3, %v1545_v1  ;;  %v1547_v5 = vmul.f32 %v2097_v11, %v2651_v6  ;;  %2108 = vrcp.f32 %v1497_v61  ;;  %v1500_v55 = vpop.xlane.xlu0 %1499 }
 0x3ea   : > { %v2099_v62 = vpop.eup %2098  ;;  %2110 = vrcp.f32 %v1500_v55 }
 0x3eb   : > { %1589 = vst.msk [vmem:[%s2692_s17 + $0xa8] sm:$0xff] %vm1215_vm3, %v1547_v5  ;;  %v1557_v33 = vmul.f32 %v2099_v62, %v2656_v41 }
 0x3ec   : > { %v2101_v58 = vpop.eup %2100  ;;  %v1503_v45 = vpop.xlane.xlu1 %1502 }
 0x3ed   : > { %1594 = vst.msk [vmem:[%s2692_s17 + $0xd0] sm:$0xff] %vm1215_vm3, %v1557_v33  ;;  %v1559_v10 = vmul.f32 %v2101_v58, %v2660_v18  ;;  %2112 = vrcp.f32 %v1503_v45 }
 0x3ee   : > { %v2103_v6 = vpop.eup %2102 }
 0x3ef   : > { %1595 = vst.msk [vmem:[%s2692_s17 + $0xd8] sm:$0xff] %vm1215_vm3, %v1559_v10  ;;  %v1553_v12 = vmul.f32 %v2103_v6, %v2664_v53 }
 0x3f0   : > { %v2105_v7 = vpop.eup %2104 }
 0x3f1   : > { %1592 = vst.msk [vmem:[%s2692_s17 + $0xc0] sm:$0xff] %vm1215_vm3, %v1553_v12  ;;  %v1555_v41 = vmul.f32 %v2105_v7, %v2668_v13 }
 0x3f2   : > { %v2107_v0 = vpop.eup %2106 }
 0x3f3   : > { %1593 = vst.msk [vmem:[%s2692_s17 + $0xc8] sm:$0xff] %vm1215_vm3, %v1555_v41  ;;  %v1561_v17 = vmul.f32 %v2107_v0, %v2672_v15 }
 0x3f5   : > { %1596 = vst.msk [vmem:[%s2692_s17 + $0xe0] sm:$0xff] %vm1215_vm3, %v1561_v17 }
 0x3f6   : > { %v2109_v18 = vpop.eup %2108 }
 0x3f7   : > { %v2111_v48 = vpop.eup %2110  ;;  %v1563_v21 = vmul.f32 %v2109_v18, %v2676_v16 }
 0x3f8   : > { %v1565_v24 = vmul.f32 %v2111_v48, %v2678_v22 }
 0x3f9   : > { %1597 = vst.msk [vmem:[%s2692_s17 + $0xe8] sm:$0xff] %vm1215_vm3, %v1563_v21 }
 0x3fa   : > { %v2113_v53 = vpop.eup %2112  ;;  %1598 = vst.msk [vmem:[%s2692_s17 + $0xf0] sm:$0xff] %vm1215_vm3, %v1565_v24 }
 0x3fb   : > { %v1567_v13 = vmul.f32 %v2113_v53, %v2684_v26 }
 0x3fd   : > { %1599 = vst.msk [vmem:[%s2692_s17 + $0xf8] sm:$0xff] %vm1215_vm3, %v1567_v13 }
 0x3fe PF: > { %s17_s24 = sadd.s32 1, %s2120_s24  }
 0x3ff   : > { %p14_p4 = scmp.ge.s32.totalorder %s17_s24, 4  }
 0x401   :  { %16 = sbr.rel (!%p14_p4) target bundleno = 1 (0x1), region = 78 }

</bundles_post_ra>
